<compile_context>
chip_gen: v7x
topology: tpu7x:2x2x1
jax: 0.10.0
libtpu: 0.0.40
codegen_flags: <defaults>
</compile_context>

<pallas_src>
import math

import jax
import jax.numpy as jnp
from jax.experimental import pallas as pl
from jax.experimental.pallas import tpu as pltpu


# ---------------- model configuration (fixed by the PyTorch Decoder) ----------------
IN_CH = 512          # latent / fc width
C0 = 256             # init deconv output channels
KH, KW = 8, 25       # init deconv kernel -> initial spatial size (8 x 25)
JL = 5               # deconv output columns handled per grid step
JC = KW // JL        # column chunks per output row
EPS = 1e-8           # PixelwiseNorm epsilon
SLOPE = 0.2          # LeakyReLU negative slope

# (in_ch, out_ch, scale_factor) for block1 .. block16
_BLOCK_CFG = [
    (256, 256, 2), (256, 256, 1), (256, 128, 1), (128, 128, 1),
    (128, 128, 1), (128, 128, 1), (128, 64, 1), (64, 64, 2),
    (64, 64, 1), (64, 64, 1), (64, 32, 1), (32, 32, 1),
    (32, 32, 1), (32, 32, 1), (32, 16, 1), (16, 16, 1),
]


def _lrelu(v):
    return jnp.where(v >= 0, v, SLOPE * v)


# =====================================================================================
# Kernel 1: init block front half -- pixnorm -> equalized fc -> lrelu -> pixnorm
# =====================================================================================
def _init_fc_kernel(x_ref, w_ref, b_ref, o_ref):
    x = x_ref[...]                                                    # (B, 512)
    x = x * jax.lax.rsqrt(jnp.mean(x * x, axis=-1, keepdims=True) + EPS)
    y = jnp.dot(x, w_ref[...], preferred_element_type=jnp.float32) + b_ref[...]
    y = _lrelu(y)
    o_ref[...] = y * jax.lax.rsqrt(jnp.mean(y * y, axis=-1, keepdims=True) + EPS)


# =====================================================================================
# Kernel 2: init deconv -- ConvTranspose2d(512->256, (8,25)) applied to a 1x1 input is a
# plain matmul y @ W[:, :, i, j] per output pixel.  The 105 MB weight is streamed in 40
# lane-dense (512, 5*256) blocks; bias + lrelu + pixnorm fused per spatial position.
# =====================================================================================
def _init_deconv_kernel(y_ref, w_ref, b_ref, o_ref):
    z = jnp.dot(y_ref[...], w_ref[0], preferred_element_type=jnp.float32)  # (B, JL*C0)
    for jl in range(JL):
        v = z[:, jl * C0:(jl + 1) * C0] + b_ref[...]                  # (B, C0)
        v = _lrelu(v)
        m = jnp.mean(v * v, axis=-1, keepdims=True)
        o_ref[:, 0, jl, :] = v * jax.lax.rsqrt(m + EPS)


# =====================================================================================
# Kernel 3: UpsamplingConvBlock body (the two equalized 3x3 convs + lrelu + pixnorm),
# operating on the flat-padded layout described above.  One pallas_call per block config,
# cached so repeated configs reuse the same compiled kernel.
# =====================================================================================
_BLOCK_CACHE = {}


def _get_conv_block_call(B, H, W, Cin, Cout):
    key = (B, H, W, Cin, Cout)
    if key in _BLOCK_CACHE:
        return _BLOCK_CACHE[key]

    P = W + 2                      # padded row width
    HP = H * P                     # rows of the "over-wide" conv result
    TOT = (H + 2) * P + 2          # flat padded length (+2 so the (ky=2,kx=2) tap slice
                                   #  stays in bounds; the extra rows are zero)

    def kernel(x_ref, w1_ref, b1_ref, w2_ref, b2_ref, o_ref, mid_scr):
        # mask of the two junk columns per row produced by the over-wide conv trick
        col = jax.lax.broadcasted_iota(jnp.int32, (HP, 1), 0) % P
        keep = col < W
        zb = jnp.zeros((P + 1, Cout), jnp.float32)

        def conv3x3(load, w_ref):
            acc = None
            for t in range(9):
                off = (t // 3) * P + (t % 3)
                d = jnp.dot(load(off), w_ref[t], preferred_element_type=jnp.float32)
                acc = d if acc is None else acc + d
            return acc                                               # (HP, Cout)

        def post(acc, b_ref):
            h = acc + b_ref[...]                                     # bias
            h = _lrelu(h)                                            # LeakyReLU(0.2)
            m = jnp.mean(h * h, axis=-1, keepdims=True)              # PixelwiseNorm
            h = h * jax.lax.rsqrt(m + EPS)
            return jnp.where(keep, h, 0.0)                           # zero pad columns

        # ---- conv1: Cin -> Cout, reading the taps straight off the input ref ----
        h1 = post(conv3x3(lambda o: x_ref[0, pl.ds(o, HP), :], w1_ref), b1_ref)

        # rebuild a zero-padded image for conv2 (only the small border strips are zeroed)
        mid_scr[pl.ds(0, P + 1), :] = zb
        mid_scr[pl.ds(P + 1, HP), :] = h1
        mid_scr[pl.ds(P + 1 + HP, P + 1), :] = zb

        # ---- conv2: Cout -> Cout ----
        h2 = post(conv3x3(lambda o: mid_scr[pl.ds(o, HP), :], w2_ref), b2_ref)

        # output in the same flat-padded layout (zero borders for the next block)
        o_ref[0, pl.ds(0, P + 1), :] = zb
        o_ref[0, pl.ds(P + 1, HP), :] = h2
        o_ref[0, pl.ds(P + 1 + HP, P + 1), :] = zb

    call = jax.jit(pl.pallas_call(
        kernel,
        out_shape=jax.ShapeDtypeStruct((B, TOT, Cout), jnp.float32),
        grid_spec=pltpu.PrefetchScalarGridSpec(
            num_scalar_prefetch=0,
            grid=(B,),
            in_specs=[
                pl.BlockSpec((1, TOT, Cin), lambda b: (b, 0, 0)),
                pl.BlockSpec((9, Cin, Cout), lambda b: (0, 0, 0)),
                pl.BlockSpec((1, Cout), lambda b: (0, 0)),
                pl.BlockSpec((9, Cout, Cout), lambda b: (0, 0, 0)),
                pl.BlockSpec((1, Cout), lambda b: (0, 0)),
            ],
            out_specs=pl.BlockSpec((1, TOT, Cout), lambda b: (b, 0, 0)),
            scratch_shapes=[pltpu.VMEM((TOT, Cout), jnp.float32)],
        ),
        compiler_params=pltpu.CompilerParams(
            dimension_semantics=("parallel",),
            vmem_limit_bytes=64 * 1024 * 1024,
        ),
    ))
    _BLOCK_CACHE[key] = call
    return call


# =====================================================================================
# Kernel 4: blockOut (equalized 1x1 conv 16 -> 1, bias) + tanh
# =====================================================================================
def _out_conv_kernel(x_ref, w_ref, b_ref, o_ref):
    x = x_ref[0]                                                      # (H, W, 16)
    y = jnp.sum(x * w_ref[0, :], axis=-1)                             # (H, W)
    o_ref[0] = jnp.tanh(y + b_ref[...])


# =====================================================================================
# layout helpers (XLA glue around the Pallas kernels)
# =====================================================================================
def _pad_flatten(x):
    """NHWC (B,H,W,C) -> flat zero-padded rows (B, (H+2)*(W+2)+2, C)."""
    B, H, W, C = x.shape
    xp = jnp.pad(x, ((0, 0), (1, 1), (1, 1), (0, 0)))
    xp = xp.reshape(B, (H + 2) * (W + 2), C)
    return jnp.pad(xp, ((0, 0), (0, 2), (0, 0)))


def _unpad(xf, H, W):
    """flat padded (B, (H+2)*(W+2)+2, C) -> NHWC (B,H,W,C)."""
    B, _, C = xf.shape
    P = W + 2
    x = xf[:, :(H + 2) * P, :].reshape(B, H + 2, P, C)
    return x[:, 1:H + 1, 1:W + 1, :]


# =====================================================================================
# Decoder forward
# =====================================================================================
def decoder_forward(x_nchw, params):
    B = x_nchw.shape[0]
    x2 = x_nchw.reshape(B, IN_CH).astype(jnp.float32)

    # ---- initBlock (front): pixnorm -> equalized fc -> lrelu -> pixnorm ----
    wfc, bfc = params["fc"]
    wfc_k = (wfc.T * math.sqrt(2.0 / IN_CH)).astype(jnp.float32)
    y = pl.pallas_call(
        _init_fc_kernel,
        out_shape=jax.ShapeDtypeStruct((B, IN_CH), jnp.float32),
        grid_spec=pltpu.PrefetchScalarGridSpec(
            num_scalar_prefetch=0, grid=(1,),
            in_specs=[pl.BlockSpec((B, IN_CH), lambda i: (0, 0)),
                      pl.BlockSpec((IN_CH, IN_CH), lambda i: (0, 0)),
                      pl.BlockSpec((1, IN_CH), lambda i: (0, 0))],
            out_specs=pl.BlockSpec((B, IN_CH), lambda i: (0, 0))),
        compiler_params=pltpu.CompilerParams(dimension_semantics=("arbitrary",)),
    )(x2, wfc_k, bfc.reshape(1, IN_CH).astype(jnp.float32))

    # ---- initBlock (back): deconv(8x25) -> lrelu -> pixnorm, streamed over the weight ----
    wd, bd = params["deconv"]
    sdc = math.sqrt(2.0 / IN_CH)       # equalized-LR scale, fan_in = c_in for deconv
    wdk = jnp.transpose(wd, (2, 3, 0, 1))                     # (KH, KW, Cin, C0)
    wdk = wdk.reshape(KH, JC, JL, IN_CH, C0)
    wdk = jnp.transpose(wdk, (0, 1, 3, 2, 4)).reshape(KH * JC, IN_CH, JL * C0)
    wdk = (wdk * sdc).astype(jnp.float32)
    h0 = pl.pallas_call(
        _init_deconv_kernel,
        out_shape=jax.ShapeDtypeStruct((B, KH * JC, JL, C0), jnp.float32),
        grid_spec=pltpu.PrefetchScalarGridSpec(
            num_scalar_prefetch=0, grid=(KH * JC,),
            in_specs=[pl.BlockSpec((B, IN_CH), lambda t: (0, 0)),
                      pl.BlockSpec((1, IN_CH, JL * C0), lambda t: (t, 0, 0)),
                      pl.BlockSpec((1, C0), lambda t: (0, 0))],
            out_specs=pl.BlockSpec((B, 1, JL, C0), lambda t: (0, t, 0, 0))),
        compiler_params=pltpu.CompilerParams(dimension_semantics=("parallel",),
                                             vmem_limit_bytes=64 * 1024 * 1024),
    )(y, wdk, bd.reshape(1, C0).astype(jnp.float32))
    h = h0.reshape(B, KH, KW, C0)                              # NHWC (B, 8, 25, 256)

    # ---- blocks 1..16 ----
    Hc, Wc = KH, KW
    flat = None
    for (cin, cout, s), (w1, b1, w2, b2) in zip(_BLOCK_CFG, params["blocks"]):
        if s > 1:
            # TODO(synk): the nearest-neighbour 2x upsample + re-pad between resolutions is
            # pure data movement done with XLA repeat/reshape glue, not inside a Pallas kernel.
            if flat is not None:
                h = _unpad(flat, Hc, Wc)
            h = jnp.repeat(jnp.repeat(h, s, axis=1), s, axis=2)
            Hc, Wc = Hc * s, Wc * s
            flat = _pad_flatten(h)
        elif flat is None:
            flat = _pad_flatten(h)
        s1 = math.sqrt(2.0 / (cin * 9))
        s2 = math.sqrt(2.0 / (cout * 9))
        w1k = (jnp.transpose(w1, (2, 3, 1, 0)).reshape(9, cin, cout) * s1).astype(jnp.float32)
        w2k = (jnp.transpose(w2, (2, 3, 1, 0)).reshape(9, cout, cout) * s2).astype(jnp.float32)
        call = _get_conv_block_call(B, Hc, Wc, cin, cout)
        flat = call(flat, w1k, b1.reshape(1, cout).astype(jnp.float32),
                    w2k, b2.reshape(1, cout).astype(jnp.float32))

    h = _unpad(flat, Hc, Wc)                                   # (B, 32, 100, 16)

    # ---- blockOut (1x1 conv 16->1) + tanh ----
    wo, bo = params["out"]
    wok = (wo[:, :, 0, 0] * math.sqrt(2.0 / 16)).astype(jnp.float32)   # (1, 16)
    out = pl.pallas_call(
        _out_conv_kernel,
        out_shape=jax.ShapeDtypeStruct((B, Hc, Wc), jnp.float32),
        grid_spec=pltpu.PrefetchScalarGridSpec(
            num_scalar_prefetch=0, grid=(B,),
            in_specs=[pl.BlockSpec((1, Hc, Wc, 16), lambda b: (b, 0, 0, 0)),
                      pl.BlockSpec((1, 16), lambda b: (0, 0)),
                      pl.BlockSpec((1, 1), lambda b: (0, 0))],
            out_specs=pl.BlockSpec((1, Hc, Wc), lambda b: (b, 0, 0))),
        compiler_params=pltpu.CompilerParams(dimension_semantics=("parallel",)),
    )(h, wok, bo.reshape(1, 1).astype(jnp.float32))
    return out.reshape(B, 1, Hc, Wc)


# =====================================================================================
# pure-JAX reference of the PyTorch forward (for verification)
# =====================================================================================
def _reference(x, params):
    hp = jax.lax.Precision.HIGHEST

    def pixnorm(v):
        return v * jax.lax.rsqrt(jnp.mean(v * v, axis=1, keepdims=True) + EPS)

    h = pixnorm(x)[:, :, 0, 0]                                 # (B, 512)
    wfc, bfc = params["fc"]
    h = jnp.dot(h, (wfc * math.sqrt(2.0 / IN_CH)).T, precision=hp) + bfc
    h = pixnorm(_lrelu(h))
    wd, bd = params["deconv"]
    h = jnp.einsum("bc,coij->boij", h, wd * math.sqrt(2.0 / IN_CH), precision=hp)
    h = pixnorm(_lrelu(h + bd[None, :, None, None]))
    for (cin, cout, s), (w1, b1, w2, b2) in zip(_BLOCK_CFG, params["blocks"]):
        if s > 1:
            h = jnp.repeat(jnp.repeat(h, s, axis=2), s, axis=3)
        h = jax.lax.conv_general_dilated(
            h, w1 * math.sqrt(2.0 / (cin * 9)), (1, 1), ((1, 1), (1, 1)),
            dimension_numbers=("NCHW", "OIHW", "NCHW"), precision=hp)
        h = pixnorm(_lrelu(h + b1[None, :, None, None]))
        h = jax.lax.conv_general_dilated(
            h, w2 * math.sqrt(2.0 / (cout * 9)), (1, 1), ((1, 1), (1, 1)),
            dimension_numbers=("NCHW", "OIHW", "NCHW"), precision=hp)
        h = pixnorm(_lrelu(h + b2[None, :, None, None]))
    wo, bo = params["out"]
    h = jnp.einsum("bihw,oi->bohw", h, wo[:, :, 0, 0] * math.sqrt(2.0 / 16),
                   precision=hp) + bo[None, :, None, None]
    return jnp.tanh(h)


# =====================================================================================
if __name__ == "__main__":
    B = 2
    key = jax.random.PRNGKey(0)
    keys = iter(jax.random.split(key, 80))

    x = jax.random.normal(next(keys), (B, IN_CH, 1, 1), jnp.float32)
    params = {
        "fc": (jax.random.normal(next(keys), (IN_CH, IN_CH), jnp.float32),
               0.1 * jax.random.normal(next(keys), (IN_CH,), jnp.float32)),
        "deconv": (jax.random.normal(next(keys), (IN_CH, C0, KH, KW), jnp.float32),
                   0.1 * jax.random.normal(next(keys), (C0,), jnp.float32)),
        "blocks": [],
        "out": (jax.random.normal(next(keys), (1, 16, 1, 1), jnp.float32),
                0.1 * jax.random.normal(next(keys), (1,), jnp.float32)),
    }
    for (cin, cout, s) in _BLOCK_CFG:
        w1 = jax.random.normal(next(keys), (cout, cin, 3, 3), jnp.float32)
        b1 = 0.1 * jax.random.normal(next(keys), (cout,), jnp.float32)
        w2 = jax.random.normal(next(keys), (cout, cout, 3, 3), jnp.float32)
        b2 = 0.1 * jax.random.normal(next(keys), (cout,), jnp.float32)
        params["blocks"].append((w1, b1, w2, b2))

    out = decoder_forward(x, params)
    out = jax.block_until_ready(out)
    assert out.shape == (B, 1, 32, 100), out.shape

    ref = _reference(x, params)
    err = float(jnp.max(jnp.abs(out - ref)))
    assert err < 5e-2, err
    print("KERNEL_OK")
</pallas_src>

<mosaic_0001>
module attributes {stable_mosaic.version = 11 : i64} {
  func.func @_init_fc_kernel(%arg0: i32, %arg1: memref<2x512xf32, #tpu.memory_space<vmem>>, %arg2: memref<512x512xf32, #tpu.memory_space<vmem>>, %arg3: memref<1x512xf32, #tpu.memory_space<vmem>>, %arg4: memref<2x512xf32, #tpu.memory_space<vmem>>) attributes {dimension_semantics = [#tpu.dimension_semantics<arbitrary>], iteration_bounds = array<i64: 1>, scalar_prefetch = 0 : i64, scratch_operands = 0 : i64, tpu.core_type = #tpu.core_type<tc>, window_params = [{pipeline_mode = #tpu.pipeline_mode<synchronous>, transform_indices = @transform_0, window_bounds = array<i64: 2, 512>}, {pipeline_mode = #tpu.pipeline_mode<synchronous>, transform_indices = @transform_1, window_bounds = array<i64: 512, 512>}, {pipeline_mode = #tpu.pipeline_mode<synchronous>, transform_indices = @transform_2, window_bounds = array<i64: 1, 512>}, {pipeline_mode = #tpu.pipeline_mode<synchronous>, transform_indices = @transform_3, window_bounds = array<i64: 2, 512>}]} {
    %c0 = arith.constant 0 : index
    %c0_0 = arith.constant 0 : index
    %0 = vector.load %arg1[%c0, %c0_0] : memref<2x512xf32, #tpu.memory_space<vmem>>, vector<2x512xf32>
    %1 = arith.mulf %0, %0 : vector<2x512xf32>
    %cst = arith.constant dense<0.000000e+00> : vector<2xf32>
    %2 = vector.multi_reduction <add>, %1, %cst [1] : vector<2x512xf32> to vector<2xf32>
    %3 = vector.shape_cast %2 : vector<2xf32> to vector<2x1xf32>
    %cst_1 = arith.constant 5.120000e+02 : f32
    %4 = vector.broadcast %cst_1 : f32 to vector<2x1xf32>
    %5 = arith.divf %3, %4 : vector<2x1xf32>
    %cst_2 = arith.constant 9.99999993E-9 : f32
    %6 = vector.broadcast %cst_2 : f32 to vector<2x1xf32>
    %7 = arith.addf %5, %6 : vector<2x1xf32>
    %8 = math.rsqrt %7 : vector<2x1xf32>
    %9 = vector.broadcast %8 : vector<2x1xf32> to vector<2x512xf32>
    %10 = arith.mulf %0, %9 : vector<2x512xf32>
    %c0_3 = arith.constant 0 : index
    %c0_4 = arith.constant 0 : index
    %11 = vector.load %arg2[%c0_3, %c0_4] : memref<512x512xf32, #tpu.memory_space<vmem>>, vector<512x512xf32>
    %cst_5 = arith.constant dense<0.000000e+00> : vector<2x512xf32>
    %12 = tpu.matmul %10, %11, %cst_5 {dimension_numbers = #tpu.dot_dimension_numbers<[1], [0], [0], [1], [0, 0, 1, 1], [], []>} : vector<2x512xf32>, vector<512x512xf32>, vector<2x512xf32> -> vector<2x512xf32>
    %c0_6 = arith.constant 0 : index
    %c0_7 = arith.constant 0 : index
    %13 = vector.load %arg3[%c0_6, %c0_7] : memref<1x512xf32, #tpu.memory_space<vmem>>, vector<1x512xf32>
    %14 = vector.broadcast %13 : vector<1x512xf32> to vector<2x512xf32>
    %15 = arith.addf %12, %14 : vector<2x512xf32>
    %cst_8 = arith.constant 0.000000e+00 : f32
    %16 = vector.broadcast %cst_8 : f32 to vector<2x512xf32>
    %17 = arith.cmpf oge, %15, %16 : vector<2x512xf32>
    %cst_9 = arith.constant 2.000000e-01 : f32
    %18 = vector.broadcast %cst_9 : f32 to vector<2x512xf32>
    %19 = arith.mulf %18, %15 : vector<2x512xf32>
    %20 = arith.select %17, %15, %19 : vector<2x512xi1>, vector<2x512xf32>
    %21 = arith.mulf %20, %20 : vector<2x512xf32>
    %cst_10 = arith.constant dense<0.000000e+00> : vector<2xf32>
    %22 = vector.multi_reduction <add>, %21, %cst_10 [1] : vector<2x512xf32> to vector<2xf32>
    %23 = vector.shape_cast %22 : vector<2xf32> to vector<2x1xf32>
    %cst_11 = arith.constant 5.120000e+02 : f32
    %24 = vector.broadcast %cst_11 : f32 to vector<2x1xf32>
    %25 = arith.divf %23, %24 : vector<2x1xf32>
    %cst_12 = arith.constant 9.99999993E-9 : f32
    %26 = vector.broadcast %cst_12 : f32 to vector<2x1xf32>
    %27 = arith.addf %25, %26 : vector<2x1xf32>
    %28 = math.rsqrt %27 : vector<2x1xf32>
    %29 = vector.broadcast %28 : vector<2x1xf32> to vector<2x512xf32>
    %30 = arith.mulf %20, %29 : vector<2x512xf32>
    %c0_13 = arith.constant 0 : index
    %c0_14 = arith.constant 0 : index
    %31 = vector.load %arg4[%c0_13, %c0_14] : memref<2x512xf32, #tpu.memory_space<vmem>>, vector<2x512xf32>
    tpu.vector_store %arg4[%c0_13, %c0_14], %30 {strides = array<i32>} : memref<2x512xf32, #tpu.memory_space<vmem>>, vector<2x512xf32>,
    return
  }
  func.func @transform_0(%arg0: i32) -> (i32, i32) {
    %c0_i32 = arith.constant 0 : i32
    %c0_i32_0 = arith.constant 0 : i32
    %c0_i32_1 = arith.constant 0 : i32
    return %c0_i32, %c0_i32_0 : i32, i32
  }
  func.func @transform_1(%arg0: i32) -> (i32, i32) {
    %c0_i32 = arith.constant 0 : i32
    %c0_i32_0 = arith.constant 0 : i32
    %c0_i32_1 = arith.constant 0 : i32
    return %c0_i32, %c0_i32_0 : i32, i32
  }
  func.func @transform_2(%arg0: i32) -> (i32, i32) {
    %c0_i32 = arith.constant 0 : i32
    %c0_i32_0 = arith.constant 0 : i32
    %c0_i32_1 = arith.constant 0 : i32
    return %c0_i32, %c0_i32_0 : i32, i32
  }
  func.func @transform_3(%arg0: i32) -> (i32, i32) {
    %c0_i32 = arith.constant 0 : i32
    %c0_i32_0 = arith.constant 0 : i32
    %c0_i32_1 = arith.constant 0 : i32
    return %c0_i32, %c0_i32_0 : i32, i32
  }
}

</mosaic_0001>

<bundles_post_ra>
// kernel: tpu_custom_call.1
= control target key start
LH: loop header
LB: loop body
LE: loop exit
PB: predicated region body
PF: predicated region fallthrough
CT: control target
= control target key end

     0   :  { %8 = vsyncpa [#allocation3], 0  ;;  %s1199_s0 = inlined_call_operand.hbm [shape: f32[2,512], index: 0, kind: input, shape index: {}]   ;;  %s1200_s1 = inlined_call_operand.hbm [shape: f32[512,512], index: 1, kind: input, shape index: {}]   ;;  %s1201_s2 = inlined_call_operand.vmem [shape: f32[1,512], index: 2, kind: input, shape index: {}]   ;;  %s1202_s3 = inlined_call_operand.hbm [shape: f32[2,512], index: 3, kind: output, shape index: {}]  }
   0x1   :  { %9 = vsyncpa [#allocation6], 0 }
   0x2   :  { %10 = vsyncpa [#allocation4], 0  ;;  %s1091_s12 = smov [#allocation2]   ;;  %s1092_s14 = smov [#allocation5]  }
   0x3   :  { %s17_s13 = sshll.u32 %s1091_s12, 4  ;;  %s26_s15 = sshll.u32 %s1092_s14, 4  ;;  %s18_s13 = int_to_ptr.vmem [resolvable:$true] %s17_s13  ;;  %s1118_s15 = int_to_ptr.vmem [resolvable:$true] %s26_s15 }
   0x4   :  { %s1019_s18 = scalar_lea.hbm %s1199_s0, 128 }
   0x5   :  { %p1020_p0 = scmp.ne.s32.totalorder %s1199_s0, %s1019_s18  ;;  %p1023_p1 = scmp.lt.u32.totalorder %s1019_s18, %s1199_s0 }
   0x7   :  { %p1025_p2 = pnand %p1023_p1, %p1020_p0 }
   0x9   :  { %1028 = shalt.err (!%p1025_p2)
}
   0xa   :  { %s1029_s23 = scalar_lea.vmem %s18_s13, 128  ;;  %p1034_p4 = scmp.lt.s32.totalorder %s18_s13, %s18_s13 }
   0xb   :  { %p1030_p3 = scmp.ne.s32.totalorder %s18_s13, %s1029_s23  ;;  %p1035_p5 = scmp.lt.s32.totalorder %s1029_s23, %s1029_s23 }
   0xd   :  { %p1036_p6 = por %p1035_p5, %p1034_p4 }
   0xf   :  { %p1037_p7 = pnand %p1036_p6, %p1030_p3 }
  0x11   :  { %1040 = shalt.err (!%p1037_p7)
}
  0x12   :  { %20 = dma.hbm_to_vmem [thread:$0]  %s1199_s0, 128, %s18_s13, [#allocation3]  }
  0x13   :  { %s1041_s28 = scalar_lea.hbm %s1200_s1, 32768 }
  0x14   :  { %p1042_p8 = scmp.ne.s32.totalorder %s1200_s1, %s1041_s28  ;;  %p1045_p9 = scmp.lt.u32.totalorder %s1041_s28, %s1200_s1 }
  0x16   :  { %p1047_p10 = pnand %p1045_p9, %p1042_p8 }
  0x18   :  { %1050 = shalt.err (!%p1047_p10)
}
  0x19   :  { %s1051_s6 = scalar_lea.vmem %s1118_s15, 32768  ;;  %p1056_p12 = scmp.lt.s32.totalorder %s1118_s15, %s1118_s15 }
  0x1a   :  { %p1052_p11 = scmp.ne.s32.totalorder %s1118_s15, %s1051_s6  ;;  %p1057_p13 = scmp.lt.s32.totalorder %s1051_s6, %s1051_s6 }
  0x1c   :  { %p1058_p0 = por %p1057_p13, %p1056_p12 }
  0x1e   :  { %p1059_p1 = pnand %p1058_p0, %p1052_p11 }
  0x20   :  { %1062 = shalt.err (!%p1059_p1)
}
  0x21   :  { %s1093_s0 = smov 512   ;;  %s1094_s7 = smov 32  }
  0x22   :  { %32 = dma.hbm_to_vmem [thread:$0]  %s1200_s1, 32768, %s1118_s15, [#allocation6], %s1093_s0, %s1093_s0, %s1094_s7  }
  0x23   :  { %1085 = dma.done.wait [#allocation3], 128  }
  0x24   :  { %1086 = vsyncadd [#allocation3], 4294967168 }
  0x25   :  { %1087 = dma.done.wait [#allocation6], 32768  }
  0x26   :  { %1088 = vsyncadd [#allocation6], 4294934528  ;;  %v48_v0 = vlaneseq  ;;  %v1095_v1 = vmov 1983009808   ;;  %v1154_v6 = vld [vmem:[#allocation2] sm:$0xff]  ;;  %v90_v7 = vld [vmem:[#allocation5 + $0x8] sm:$0xff] }
  0x27   :  { %v46_v2 = vunpack.c.l.s4 %v1095_v1  ;;  %v94_v8 = vld [vmem:[#allocation5 + $0x28] sm:$0xff]  ;;  %v42_v9 = vmul.f32 %v1154_v6, %v1154_v6  ;;  %v92_v11 = vld [vmem:[#allocation5 + $0x18] sm:$0xff]  ;;  %v89_v13 = vld [vmem:[#allocation5] sm:$0xff]  ;;  %vm65_vm0 = vcmask 1041408  }
  0x28   :  { %v1149_v3 = vshrl.u32 %v48_v0, 7  ;;  %v744_v10 = vpack.c.bf16 %v94_v8, %v90_v7  ;;  %v96_v12 = vld [vmem:[#allocation5 + $0x38] sm:$0xff]  ;;  %v93_v15 = vld [vmem:[#allocation5 + $0x20] sm:$0xff]  ;;  %v91_v16 = vld [vmem:[#allocation5 + $0x10] sm:$0xff] }
  0x29   :  { %v47_v4 = vunpack.c.0.s8 %v46_v2  ;;  %v872_v14 = vpack.c.bf16 %v96_v12, %v92_v11  ;;  %v95_v17 = vld [vmem:[#allocation5 + $0x30] sm:$0xff]  ;;  %v44_v18 = vcombine.high %v42_v9, %v42_v9  ;;  %v746_v20 = vpack.c.bf16 %v93_v15, %v89_v13  ;;  %v98_v22 = vld [vmem:[#allocation5 + $0x48] sm:$0xff]  ;;  %v100_v24 = vld [vmem:[#allocation5 + $0x58] sm:$0xff] }
  0x2a   :  { %745 = vmatprep.subr.bf16.mxu0 %v744_v10  ;;  %v874_v21 = vpack.c.bf16 %v95_v17, %v91_v16  ;;  %v102_v23 = vld [vmem:[#allocation5 + $0x68] sm:$0xff]  ;;  %v104_v26 = vld [vmem:[#allocation5 + $0x78] sm:$0xff]  ;;  %v97_v27 = vld [vmem:[#allocation5 + $0x40] sm:$0xff] }
  0x2b   :  { %v1152_v5 = vsub.s32 %v47_v4, %v1149_v3  ;;  %873 = vmatprep.subr.bf16.mxu1 %v872_v14  ;;  %v748_v25 = vpack.c.bf16 %v102_v23, %v98_v22  ;;  %v101_v28 = vld [vmem:[#allocation5 + $0x60] sm:$0xff]  ;;  %747 = vmatpush1.bf16.msra.mxu0 %v746_v20  ;;  %v876_v32 = vpack.c.bf16 %v104_v26, %v100_v24  ;;  %v99_v33 = vld [vmem:[#allocation5 + $0x50] sm:$0xff]  ;;  %v106_v35 = vld [vmem:[#allocation5 + $0x88] sm:$0xff] }
  0x2c   :  { %875 = vmatpush1.bf16.msra.mxu1 %v874_v21  ;;  %v103_v34 = vld [vmem:[#allocation5 + $0x70] sm:$0xff]  ;;  %v750_v36 = vpack.c.bf16 %v101_v28, %v97_v27  ;;  %v110_v38 = vld [vmem:[#allocation5 + $0xa8] sm:$0xff]  ;;  %v108_v39 = vld [vmem:[#allocation5 + $0x98] sm:$0xff] }
  0x2d   :  { %v51_v19 = vrot.slane %v42_v9, %v1152_v5  ;;  %v58_v29 = vrot.slane %v44_v18, %v1152_v5  ;;  %749 = vmatprep.subr.bf16.mxu0 %v748_v25  ;;  %v878_v37 = vpack.c.bf16 %v103_v34, %v99_v33  ;;  %v112_v40 = vld [vmem:[#allocation5 + $0xb8] sm:$0xff]  ;;  %877 = vmatprep.subr.bf16.mxu1 %v876_v32  ;;  %v105_v45 = vld [vmem:[#allocation5 + $0x80] sm:$0xff]  ;;  %v107_v47 = vld [vmem:[#allocation5 + $0x90] sm:$0xff] }
  0x2e   :  { %v752_v44 = vpack.c.bf16 %v110_v38, %v106_v35  ;;  %v109_v46 = vld [vmem:[#allocation5 + $0xa0] sm:$0xff]  ;;  %v880_v49 = vpack.c.bf16 %v112_v40, %v108_v39  ;;  %v111_v50 = vld [vmem:[#allocation5 + $0xb0] sm:$0xff]  ;;  %v114_v51 = vld [vmem:[#allocation5 + $0xc8] sm:$0xff] }
  0x2f   :  { %v59_v30 = vcombine.high %v51_v19, %v51_v19  ;;  %v66_v31 = vsel %vm65_vm0, %v51_v19, 0.0  ;;  %v60_v41 = vcombine.high %v58_v29, %v58_v29  ;;  %v69_v43 = vsel %vm65_vm0, %v58_v29, 0.0  ;;  %v118_v52 = vld [vmem:[#allocation5 + $0xe8] sm:$0xff]  ;;  %751 = vmatpush1.bf16.msra.mxu0 %v750_v36  ;;  %v116_v56 = vld [vmem:[#allocation5 + $0xd8] sm:$0xff]  ;;  %v113_v58 = vld [vmem:[#allocation5 + $0xc0] sm:$0xff] }
  0x30   :  { %879 = vmatpush1.bf16.msra.mxu1 %v878_v37  ;;  %v754_v54 = vpack.c.bf16 %v109_v46, %v105_v45  ;;  %v882_v55 = vpack.c.bf16 %v111_v50, %v107_v47  ;;  %v120_v57 = vld [vmem:[#allocation5 + $0xf8] sm:$0xff]  ;;  %753 = vmatprep.subr.bf16.mxu0 %v752_v44  ;;  %v756_v60 = vpack.c.bf16 %v118_v52, %v114_v51  ;;  %v117_v61 = vld [vmem:[#allocation5 + $0xe0] sm:$0xff]  ;;  %v115_v62 = vld [vmem:[#allocation5 + $0xd0] sm:$0xff] }
  0x31   :  { %v67_v42 = vsel %vm65_vm0, %v59_v30, 0.0  ;;  %v71_v53 = vsel %vm65_vm0, %v60_v41, 0.0  ;;  %881 = vmatprep.subr.bf16.mxu1 %v880_v49  ;;  %v119_v63 = vld [vmem:[#allocation5 + $0xf0] sm:$0xff]  ;;  %v884_v0 = vpack.c.bf16 %v120_v57, %v116_v56  ;;  %v122_v1 = vld [vmem:[#allocation5 + $0x108] sm:$0xff]  ;;  %v124_v4 = vld [vmem:[#allocation5 + $0x118] sm:$0xff]  ;;  %v758_v9 = vpack.c.bf16 %v117_v61, %v113_v58 }
  0x32   :  { %v68_v48 = vadd.f32 %v67_v42, %v66_v31  ;;  %v126_v2 = vld [vmem:[#allocation5 + $0x128] sm:$0xff]  ;;  %v128_v8 = vld [vmem:[#allocation5 + $0x138] sm:$0xff]  ;;  %v886_v10 = vpack.c.bf16 %v119_v63, %v115_v62  ;;  %v121_v11 = vld [vmem:[#allocation5 + $0x100] sm:$0xff] }
  0x33   :  { %755 = vmatpush1.bf16.msra.mxu0 %v754_v54  ;;  %v125_v12 = vld [vmem:[#allocation5 + $0x120] sm:$0xff]  ;;  %v760_v13 = vpack.c.bf16 %v126_v2, %v122_v1  ;;  %v888_v14 = vpack.c.bf16 %v128_v8, %v124_v4  ;;  %v123_v15 = vld [vmem:[#allocation5 + $0x110] sm:$0xff]  ;;  %v130_v17 = vld [vmem:[#allocation5 + $0x148] sm:$0xff] }
  0x34   :  { %v70_v59 = vadd.f32 %v69_v43, %v68_v48  ;;  %883 = vmatpush1.bf16.msra.mxu1 %v882_v55  ;;  %757 = vmatprep.subr.bf16.mxu0 %v756_v60  ;;  %v127_v16 = vld [vmem:[#allocation5 + $0x130] sm:$0xff]  ;;  %v134_v18 = vld [vmem:[#allocation5 + $0x168] sm:$0xff]  ;;  %v132_v19 = vld [vmem:[#allocation5 + $0x158] sm:$0xff]  ;;  %v762_v21 = vpack.c.bf16 %v125_v12, %v121_v11 }
  0x35   :  { %885 = vmatprep.subr.bf16.mxu1 %v884_v0  ;;  %v136_v20 = vld [vmem:[#allocation5 + $0x178] sm:$0xff]  ;;  %v890_v22 = vpack.c.bf16 %v127_v16, %v123_v15  ;;  %v129_v23 = vld [vmem:[#allocation5 + $0x140] sm:$0xff]  ;;  %v764_v25 = vpack.c.bf16 %v134_v18, %v130_v17  ;;  %v131_v27 = vld [vmem:[#allocation5 + $0x150] sm:$0xff] }
  0x36   :  { %v72_v7 = vadd.f32 %v71_v53, %v70_v59  ;;  %v133_v24 = vld [vmem:[#allocation5 + $0x160] sm:$0xff]  ;;  %v892_v26 = vpack.c.bf16 %v136_v20, %v132_v19  ;;  %v135_v28 = vld [vmem:[#allocation5 + $0x170] sm:$0xff]  ;;  %v138_v29 = vld [vmem:[#allocation5 + $0x188] sm:$0xff] }
  0x37   :  { %759 = vmatpush1.bf16.msra.mxu0 %v758_v9  ;;  %v142_v30 = vld [vmem:[#allocation5 + $0x1a8] sm:$0xff]  ;;  %v140_v31 = vld [vmem:[#allocation5 + $0x198] sm:$0xff]  ;;  %v766_v33 = vpack.c.bf16 %v133_v24, %v129_v23  ;;  %v894_v34 = vpack.c.bf16 %v135_v28, %v131_v27  ;;  %v137_v35 = vld [vmem:[#allocation5 + $0x180] sm:$0xff] }
  0x38   :  { %73 = vadd.xlane.f32.xlu0 %v72_v7  ;;  %887 = vmatpush1.bf16.msra.mxu1 %v886_v10  ;;  %v144_v32 = vld [vmem:[#allocation5 + $0x1b8] sm:$0xff]  ;;  %v141_v36 = vld [vmem:[#allocation5 + $0x1a0] sm:$0xff]  ;;  %v768_v37 = vpack.c.bf16 %v142_v30, %v138_v29  ;;  %v139_v39 = vld [vmem:[#allocation5 + $0x190] sm:$0xff] }
  0x39   :  { %761 = vmatprep.subr.bf16.mxu0 %v760_v13  ;;  %889 = vmatprep.subr.bf16.mxu1 %v888_v14  ;;  %v896_v38 = vpack.c.bf16 %v144_v32, %v140_v31  ;;  %v143_v40 = vld [vmem:[#allocation5 + $0x1b0] sm:$0xff]  ;;  %v146_v41 = vld [vmem:[#allocation5 + $0x1c8] sm:$0xff]  ;;  %v148_v43 = vld [vmem:[#allocation5 + $0x1d8] sm:$0xff]  ;;  %v770_v45 = vpack.c.bf16 %v141_v36, %v137_v35 }
  0x3a   :  { %v150_v42 = vld [vmem:[#allocation5 + $0x1e8] sm:$0xff]  ;;  %v152_v44 = vld [vmem:[#allocation5 + $0x1f8] sm:$0xff]  ;;  %v898_v46 = vpack.c.bf16 %v143_v40, %v139_v39  ;;  %v145_v47 = vld [vmem:[#allocation5 + $0x1c0] sm:$0xff] }
  0x3b   :  { %763 = vmatpush1.bf16.msra.mxu0 %v762_v21  ;;  %v149_v48 = vld [vmem:[#allocation5 + $0x1e0] sm:$0xff]  ;;  %v772_v49 = vpack.c.bf16 %v150_v42, %v146_v41  ;;  %v900_v50 = vpack.c.bf16 %v152_v44, %v148_v43  ;;  %v147_v51 = vld [vmem:[#allocation5 + $0x1d0] sm:$0xff]  ;;  %v154_v53 = vld [vmem:[#allocation5 + $0x208] sm:$0xff] }
  0x3c   :  { %891 = vmatpush1.bf16.msra.mxu1 %v890_v22  ;;  %765 = vmatprep.subr.bf16.mxu0 %v764_v25  ;;  %v151_v52 = vld [vmem:[#allocation5 + $0x1f0] sm:$0xff]  ;;  %v158_v54 = vld [vmem:[#allocation5 + $0x228] sm:$0xff]  ;;  %v156_v55 = vld [vmem:[#allocation5 + $0x218] sm:$0xff]  ;;  %v774_v57 = vpack.c.bf16 %v149_v48, %v145_v47 }
  0x3d   :  { %893 = vmatprep.subr.bf16.mxu1 %v892_v26  ;;  %v160_v56 = vld [vmem:[#allocation5 + $0x238] sm:$0xff]  ;;  %v902_v58 = vpack.c.bf16 %v151_v52, %v147_v51  ;;  %v153_v59 = vld [vmem:[#allocation5 + $0x200] sm:$0xff]  ;;  %v776_v61 = vpack.c.bf16 %v158_v54, %v154_v53  ;;  %v155_v63 = vld [vmem:[#allocation5 + $0x210] sm:$0xff] }
  0x3e   :  { %v157_v60 = vld [vmem:[#allocation5 + $0x220] sm:$0xff]  ;;  %v904_v62 = vpack.c.bf16 %v160_v56, %v156_v55  ;;  %v159_v0 = vld [vmem:[#allocation5 + $0x230] sm:$0xff]  ;;  %v162_v1 = vld [vmem:[#allocation5 + $0x248] sm:$0xff] }
  0x3f   :  { %767 = vmatpush1.bf16.msra.mxu0 %v766_v33  ;;  %v166_v2 = vld [vmem:[#allocation5 + $0x268] sm:$0xff]  ;;  %v164_v4 = vld [vmem:[#allocation5 + $0x258] sm:$0xff]  ;;  %v778_v8 = vpack.c.bf16 %v157_v60, %v153_v59  ;;  %v906_v9 = vpack.c.bf16 %v159_v0, %v155_v63  ;;  %v161_v10 = vld [vmem:[#allocation5 + $0x240] sm:$0xff] }
  0x40   :  { %895 = vmatpush1.bf16.msra.mxu1 %v894_v34  ;;  %769 = vmatprep.subr.bf16.mxu0 %v768_v37  ;;  %v168_v7 = vld [vmem:[#allocation5 + $0x278] sm:$0xff]  ;;  %v165_v11 = vld [vmem:[#allocation5 + $0x260] sm:$0xff]  ;;  %v780_v12 = vpack.c.bf16 %v166_v2, %v162_v1  ;;  %v163_v14 = vld [vmem:[#allocation5 + $0x250] sm:$0xff] }
  0x41   :  { %897 = vmatprep.subr.bf16.mxu1 %v896_v38  ;;  %v908_v13 = vpack.c.bf16 %v168_v7, %v164_v4  ;;  %v167_v15 = vld [vmem:[#allocation5 + $0x270] sm:$0xff]  ;;  %v170_v16 = vld [vmem:[#allocation5 + $0x288] sm:$0xff]  ;;  %v172_v18 = vld [vmem:[#allocation5 + $0x298] sm:$0xff]  ;;  %v782_v20 = vpack.c.bf16 %v165_v11, %v161_v10 }
  0x42   :  { %v174_v17 = vld [vmem:[#allocation5 + $0x2a8] sm:$0xff]  ;;  %v176_v19 = vld [vmem:[#allocation5 + $0x2b8] sm:$0xff]  ;;  %v910_v21 = vpack.c.bf16 %v167_v15, %v163_v14  ;;  %v169_v22 = vld [vmem:[#allocation5 + $0x280] sm:$0xff] }
  0x43   :  { %771 = vmatpush1.bf16.msra.mxu0 %v770_v45  ;;  %v173_v23 = vld [vmem:[#allocation5 + $0x2a0] sm:$0xff]  ;;  %v784_v24 = vpack.c.bf16 %v174_v17, %v170_v16  ;;  %v912_v25 = vpack.c.bf16 %v176_v19, %v172_v18  ;;  %v171_v26 = vld [vmem:[#allocation5 + $0x290] sm:$0xff]  ;;  %v178_v28 = vld [vmem:[#allocation5 + $0x2c8] sm:$0xff] }
  0x44   :  { %899 = vmatpush1.bf16.msra.mxu1 %v898_v46  ;;  %773 = vmatprep.subr.bf16.mxu0 %v772_v49  ;;  %v175_v27 = vld [vmem:[#allocation5 + $0x2b0] sm:$0xff]  ;;  %v182_v29 = vld [vmem:[#allocation5 + $0x2e8] sm:$0xff]  ;;  %v180_v30 = vld [vmem:[#allocation5 + $0x2d8] sm:$0xff]  ;;  %v786_v32 = vpack.c.bf16 %v173_v23, %v169_v22 }
  0x45   :  { %901 = vmatprep.subr.bf16.mxu1 %v900_v50  ;;  %v184_v31 = vld [vmem:[#allocation5 + $0x2f8] sm:$0xff]  ;;  %v914_v33 = vpack.c.bf16 %v175_v27, %v171_v26  ;;  %v177_v34 = vld [vmem:[#allocation5 + $0x2c0] sm:$0xff]  ;;  %v788_v36 = vpack.c.bf16 %v182_v29, %v178_v28  ;;  %v179_v38 = vld [vmem:[#allocation5 + $0x2d0] sm:$0xff] }
  0x46   :  { %v181_v35 = vld [vmem:[#allocation5 + $0x2e0] sm:$0xff]  ;;  %v916_v37 = vpack.c.bf16 %v184_v31, %v180_v30  ;;  %v183_v39 = vld [vmem:[#allocation5 + $0x2f0] sm:$0xff]  ;;  %v186_v40 = vld [vmem:[#allocation5 + $0x308] sm:$0xff] }
  0x47   :  { %775 = vmatpush1.bf16.msra.mxu0 %v774_v57  ;;  %v190_v41 = vld [vmem:[#allocation5 + $0x328] sm:$0xff]  ;;  %v188_v42 = vld [vmem:[#allocation5 + $0x318] sm:$0xff]  ;;  %v790_v44 = vpack.c.bf16 %v181_v35, %v177_v34  ;;  %v918_v45 = vpack.c.bf16 %v183_v39, %v179_v38  ;;  %v185_v46 = vld [vmem:[#allocation5 + $0x300] sm:$0xff]  ;;  %v1096_v38 = vmov 269488144  }
  0x48   :  { %903 = vmatpush1.bf16.msra.mxu1 %v902_v58  ;;  %777 = vmatprep.subr.bf16.mxu0 %v776_v61  ;;  %v192_v43 = vld [vmem:[#allocation5 + $0x338] sm:$0xff]  ;;  %v189_v47 = vld [vmem:[#allocation5 + $0x320] sm:$0xff]  ;;  %v792_v48 = vpack.c.bf16 %v190_v41, %v186_v40  ;;  %v187_v50 = vld [vmem:[#allocation5 + $0x310] sm:$0xff]  ;;  %v81_v39 = vunpack.c.l.s4 %v1096_v38 }
  0x49   :  { %905 = vmatprep.subr.bf16.mxu1 %v904_v62  ;;  %v920_v49 = vpack.c.bf16 %v192_v43, %v188_v42  ;;  %v191_v51 = vld [vmem:[#allocation5 + $0x330] sm:$0xff]  ;;  %v194_v52 = vld [vmem:[#allocation5 + $0x348] sm:$0xff]  ;;  %v196_v54 = vld [vmem:[#allocation5 + $0x358] sm:$0xff]  ;;  %v794_v56 = vpack.c.bf16 %v189_v47, %v185_v46 }
  0x4a   :  { %v198_v53 = vld [vmem:[#allocation5 + $0x368] sm:$0xff]  ;;  %v200_v55 = vld [vmem:[#allocation5 + $0x378] sm:$0xff]  ;;  %v922_v57 = vpack.c.bf16 %v191_v51, %v187_v50  ;;  %v193_v58 = vld [vmem:[#allocation5 + $0x340] sm:$0xff]  ;;  %v82_v40 = vunpack.c.0.s8 %v81_v39 }
  0x4b   :  { %779 = vmatpush1.bf16.msra.mxu0 %v778_v8  ;;  %v197_v59 = vld [vmem:[#allocation5 + $0x360] sm:$0xff]  ;;  %v796_v60 = vpack.c.bf16 %v198_v53, %v194_v52  ;;  %v924_v61 = vpack.c.bf16 %v200_v55, %v196_v54  ;;  %v195_v62 = vld [vmem:[#allocation5 + $0x350] sm:$0xff]  ;;  %v202_v0 = vld [vmem:[#allocation5 + $0x388] sm:$0xff] }
  0x4c   :  { %907 = vmatpush1.bf16.msra.mxu1 %v906_v9  ;;  %781 = vmatprep.subr.bf16.mxu0 %v780_v12  ;;  %v199_v63 = vld [vmem:[#allocation5 + $0x370] sm:$0xff]  ;;  %v206_v1 = vld [vmem:[#allocation5 + $0x3a8] sm:$0xff]  ;;  %v204_v2 = vld [vmem:[#allocation5 + $0x398] sm:$0xff]  ;;  %v798_v7 = vpack.c.bf16 %v197_v59, %v193_v58  ;;  %v85_v41 = vsub.s32 %v82_v40, %v1149_v3 }
  0x4d   :  { %909 = vmatprep.subr.bf16.mxu1 %v908_v13  ;;  %v208_v4 = vld [vmem:[#allocation5 + $0x3b8] sm:$0xff]  ;;  %v926_v8 = vpack.c.bf16 %v199_v63, %v195_v62  ;;  %v201_v9 = vld [vmem:[#allocation5 + $0x380] sm:$0xff]  ;;  %v800_v11 = vpack.c.bf16 %v206_v1, %v202_v0  ;;  %v203_v13 = vld [vmem:[#allocation5 + $0x390] sm:$0xff] }
  0x4e   :  { %v205_v10 = vld [vmem:[#allocation5 + $0x3a0] sm:$0xff]  ;;  %v928_v12 = vpack.c.bf16 %v208_v4, %v204_v2  ;;  %v207_v14 = vld [vmem:[#allocation5 + $0x3b0] sm:$0xff]  ;;  %v210_v15 = vld [vmem:[#allocation5 + $0x3c8] sm:$0xff] }
  0x4f   :  { %783 = vmatpush1.bf16.msra.mxu0 %v782_v20  ;;  %v214_v16 = vld [vmem:[#allocation5 + $0x3e8] sm:$0xff]  ;;  %v212_v17 = vld [vmem:[#allocation5 + $0x3d8] sm:$0xff]  ;;  %v802_v19 = vpack.c.bf16 %v205_v10, %v201_v9  ;;  %v930_v20 = vpack.c.bf16 %v207_v14, %v203_v13  ;;  %v213_v22 = vld [vmem:[#allocation5 + $0x3e0] sm:$0xff] }
  0x50   :  { %911 = vmatpush1.bf16.msra.mxu1 %v910_v21  ;;  %785 = vmatprep.subr.bf16.mxu0 %v784_v24  ;;  %v216_v18 = vld [vmem:[#allocation5 + $0x3f8] sm:$0xff]  ;;  %v209_v21 = vld [vmem:[#allocation5 + $0x3c0] sm:$0xff]  ;;  %v804_v23 = vpack.c.bf16 %v214_v16, %v210_v15  ;;  %v215_v26 = vld [vmem:[#allocation5 + $0x3f0] sm:$0xff] }
  0x51   :  { %913 = vmatprep.subr.bf16.mxu1 %v912_v25  ;;  %v932_v24 = vpack.c.bf16 %v216_v18, %v212_v17  ;;  %v211_v25 = vld [vmem:[#allocation5 + $0x3d0] sm:$0xff]  ;;  %v218_v27 = vld [vmem:[#allocation5 + $0x408] sm:$0xff]  ;;  %v220_v29 = vld [vmem:[#allocation5 + $0x418] sm:$0xff]  ;;  %v806_v31 = vpack.c.bf16 %v213_v22, %v209_v21 }
  0x52   :  { %v222_v28 = vld [vmem:[#allocation5 + $0x428] sm:$0xff]  ;;  %v224_v30 = vld [vmem:[#allocation5 + $0x438] sm:$0xff]  ;;  %v221_v46 = vld [vmem:[#allocation5 + $0x420] sm:$0xff] }
  0x53   :  { %787 = vmatpush1.bf16.msra.mxu0 %v786_v32  ;;  %v934_v32 = vpack.c.bf16 %v215_v26, %v211_v25  ;;  %v936_v34 = vpack.c.bf16 %v224_v30, %v220_v29  ;;  %v219_v47 = vld [vmem:[#allocation5 + $0x410] sm:$0xff]  ;;  %v226_v51 = vld [vmem:[#allocation5 + $0x448] sm:$0xff]  ;;  %v228_v53 = vld [vmem:[#allocation5 + $0x458] sm:$0xff] }
  0x54   :  { %915 = vmatpush1.bf16.msra.mxu1 %v914_v33  ;;  %789 = vmatprep.subr.bf16.mxu0 %v788_v36  ;;  %v808_v33 = vpack.c.bf16 %v222_v28, %v218_v27  ;;  %v230_v52 = vld [vmem:[#allocation5 + $0x468] sm:$0xff]  ;;  %v232_v54 = vld [vmem:[#allocation5 + $0x478] sm:$0xff]  ;;  %v225_v59 = vld [vmem:[#allocation5 + $0x440] sm:$0xff] }
  0x55   :  { %917 = vmatprep.subr.bf16.mxu1 %v916_v37  ;;  %v234_v62 = vld [vmem:[#allocation5 + $0x488] sm:$0xff]  ;;  %v812_v0 = vpack.c.bf16 %v230_v52, %v226_v51  ;;  %v940_v1 = vpack.c.bf16 %v232_v54, %v228_v53  ;;  %v236_v4 = vld [vmem:[#allocation5 + $0x498] sm:$0xff]  ;;  %v233_v10 = vld [vmem:[#allocation5 + $0x480] sm:$0xff] }
  0x56   :  { %v238_v2 = vld [vmem:[#allocation5 + $0x4a8] sm:$0xff]  ;;  %v235_v14 = vld [vmem:[#allocation5 + $0x490] sm:$0xff]  ;;  %v244_v18 = vld [vmem:[#allocation5 + $0x4d8] sm:$0xff] }
  0x57   :  { %791 = vmatpush1.bf16.msra.mxu0 %v790_v44  ;;  %v239_v15 = vld [vmem:[#allocation5 + $0x4b0] sm:$0xff]  ;;  %v242_v16 = vld [vmem:[#allocation5 + $0x4c8] sm:$0xff]  ;;  %v241_v22 = vld [vmem:[#allocation5 + $0x4c0] sm:$0xff] }
  0x58   :  { %919 = vmatpush1.bf16.msra.mxu1 %v918_v45  ;;  %793 = vmatprep.subr.bf16.mxu0 %v792_v48  ;;  %v217_v45 = vld [vmem:[#allocation5 + $0x400] sm:$0xff]  ;;  %v223_v48 = vld [vmem:[#allocation5 + $0x430] sm:$0xff]  ;;  %v246_v17 = vld [vmem:[#allocation5 + $0x4e8] sm:$0xff]  ;;  %v946_v21 = vpack.c.bf16 %v239_v15, %v235_v14 }
  0x59   :  { %921 = vmatprep.subr.bf16.mxu1 %v920_v49  ;;  %v243_v26 = vld [vmem:[#allocation5 + $0x4d0] sm:$0xff]  ;;  %v250_v28 = vld [vmem:[#allocation5 + $0x508] sm:$0xff]  ;;  %v252_v30 = vld [vmem:[#allocation5 + $0x518] sm:$0xff] }
  0x5a   :  { %v247_v27 = vld [vmem:[#allocation5 + $0x4f0] sm:$0xff]  ;;  %v254_v29 = vld [vmem:[#allocation5 + $0x528] sm:$0xff]  ;;  %v268_v54 = vld [vmem:[#allocation5 + $0x598] sm:$0xff] }
  0x5b   :  { %795 = vmatpush1.bf16.msra.mxu0 %v794_v56  ;;  %v810_v56 = vpack.c.bf16 %v221_v46, %v217_v45  ;;  %v251_v38 = vld [vmem:[#allocation5 + $0x510] sm:$0xff]  ;;  %v258_v40 = vld [vmem:[#allocation5 + $0x548] sm:$0xff]  ;;  %v257_v46 = vld [vmem:[#allocation5 + $0x540] sm:$0xff] }
  0x5c   :  { %923 = vmatpush1.bf16.msra.mxu1 %v922_v57  ;;  %797 = vmatprep.subr.bf16.mxu0 %v796_v60  ;;  %v938_v57 = vpack.c.bf16 %v223_v48, %v219_v47  ;;  %v229_v60 = vld [vmem:[#allocation5 + $0x460] sm:$0xff]  ;;  %v255_v39 = vld [vmem:[#allocation5 + $0x530] sm:$0xff]  ;;  %v266_v52 = vld [vmem:[#allocation5 + $0x588] sm:$0xff] }
  0x5d   :  { %925 = vmatprep.subr.bf16.mxu1 %v924_v61  ;;  %v231_v61 = vld [vmem:[#allocation5 + $0x470] sm:$0xff]  ;;  %v954_v45 = vpack.c.bf16 %v255_v39, %v251_v38  ;;  %v261_v47 = vld [vmem:[#allocation5 + $0x560] sm:$0xff]  ;;  %v270_v53 = vld [vmem:[#allocation5 + $0x5a8] sm:$0xff] }
  0x5e   :  { %v263_v51 = vld [vmem:[#allocation5 + $0x570] sm:$0xff]  ;;  %v282_v15 = vld [vmem:[#allocation5 + $0x608] sm:$0xff] }
  0x5f   :  { %799 = vmatpush1.bf16.msra.mxu0 %v798_v7  ;;  %v240_v7 = vld [vmem:[#allocation5 + $0x4b8] sm:$0xff]  ;;  %v279_v14 = vld [vmem:[#allocation5 + $0x5f0] sm:$0xff]  ;;  %v298_v39 = vld [vmem:[#allocation5 + $0x688] sm:$0xff] }
  0x60   :  { %927 = vmatpush1.bf16.msra.mxu1 %v926_v8  ;;  %801 = vmatprep.subr.bf16.mxu0 %v800_v11  ;;  %v814_v8 = vpack.c.bf16 %v229_v60, %v225_v59  ;;  %v237_v11 = vld [vmem:[#allocation5 + $0x4a0] sm:$0xff]  ;;  %v944_v13 = vpack.c.bf16 %v240_v7, %v236_v4  ;;  %v280_v4 = vld [vmem:[#allocation5 + $0x5f8] sm:$0xff]  ;;  %v295_v38 = vld [vmem:[#allocation5 + $0x670] sm:$0xff] }
  0x61   :  { %929 = vmatprep.subr.bf16.mxu1 %v928_v12  ;;  %v816_v12 = vpack.c.bf16 %v238_v2, %v234_v62  ;;  %v265_v59 = vld [vmem:[#allocation5 + $0x580] sm:$0xff]  ;;  %v267_v62 = vld [vmem:[#allocation5 + $0x590] sm:$0xff]  ;;  %v276_v2 = vld [vmem:[#allocation5 + $0x5d8] sm:$0xff] }
  0x62   :  { %v269_v60 = vld [vmem:[#allocation5 + $0x5a0] sm:$0xff] }
  0x63   :  { %803 = vmatpush1.bf16.msra.mxu0 %v802_v19  ;;  %v248_v19 = vld [vmem:[#allocation5 + $0x4f8] sm:$0xff]  ;;  %v834_v7 = vpack.c.bf16 %v269_v60, %v265_v59  ;;  %v309_v59 = vld [vmem:[#allocation5 + $0x6e0] sm:$0xff] }
  0x64   :  { %931 = vmatpush1.bf16.msra.mxu1 %v930_v20  ;;  %805 = vmatprep.subr.bf16.mxu0 %v804_v23  ;;  %v818_v20 = vpack.c.bf16 %v237_v11, %v233_v10  ;;  %v245_v23 = vld [vmem:[#allocation5 + $0x4e0] sm:$0xff]  ;;  %v948_v25 = vpack.c.bf16 %v248_v19, %v244_v18  ;;  %v288_v18 = vld [vmem:[#allocation5 + $0x638] sm:$0xff] }
  0x65   :  { %933 = vmatprep.subr.bf16.mxu1 %v932_v24  ;;  %v820_v24 = vpack.c.bf16 %v246_v17, %v242_v16  ;;  %v277_v10 = vld [vmem:[#allocation5 + $0x5e0] sm:$0xff]  ;;  %v286_v16 = vld [vmem:[#allocation5 + $0x628] sm:$0xff]  ;;  %v284_v17 = vld [vmem:[#allocation5 + $0x618] sm:$0xff] }
  0x67   :  { %807 = vmatpush1.bf16.msra.mxu0 %v806_v31  ;;  %v256_v31 = vld [vmem:[#allocation5 + $0x538] sm:$0xff] }
  0x68   :  { %935 = vmatpush1.bf16.msra.mxu1 %v934_v32  ;;  %809 = vmatprep.subr.bf16.mxu0 %v808_v33  ;;  %v822_v32 = vpack.c.bf16 %v245_v23, %v241_v22  ;;  %v950_v33 = vpack.c.bf16 %v247_v27, %v243_v26  ;;  %v285_v22 = vld [vmem:[#allocation5 + $0x620] sm:$0xff]  ;;  %v840_v23 = vpack.c.bf16 %v286_v16, %v282_v15  ;;  %v287_v26 = vld [vmem:[#allocation5 + $0x630] sm:$0xff]  ;;  %v290_v27 = vld [vmem:[#allocation5 + $0x648] sm:$0xff] }
  0x69   :  { %937 = vmatprep.subr.bf16.mxu1 %v936_v34  ;;  %v249_v34 = vld [vmem:[#allocation5 + $0x500] sm:$0xff]  ;;  %v326_v15 = vld [vmem:[#allocation5 + $0x768] sm:$0xff]  ;;  %v324_v16 = vld [vmem:[#allocation5 + $0x758] sm:$0xff] }
  0xc5   :  { %v74_v35 = vpop.xlane.xlu0 %73 }
  0xc6   :  { %v76_v36 = vmul.f32 0.001953125, %v74_v35  ;;  %v253_v35 = vld [vmem:[#allocation5 + $0x520] sm:$0xff] }
  0xc8   :  { %v77_v37 = vadd.f32 1e-08, %v76_v36  ;;  %v824_v36 = vpack.c.bf16 %v254_v29, %v250_v28  ;;  %v294_v28 = vld [vmem:[#allocation5 + $0x668] sm:$0xff]  ;;  %v292_v29 = vld [vmem:[#allocation5 + $0x658] sm:$0xff] }
  0xca   :  { %1015 = vrsqrt.f32 %v77_v37  ;;  %v952_v37 = vpack.c.bf16 %v256_v31, %v252_v30  ;;  %v296_v30 = vld [vmem:[#allocation5 + $0x678] sm:$0xff] }
  0xd4   :  { %v1016_v42 = vpop.eup %1015 }
  0xd5   :  { %v86_v43 = vrot.slane %v1016_v42, %v85_v41  ;;  %v262_v41 = vld [vmem:[#allocation5 + $0x568] sm:$0xff]  ;;  %v260_v42 = vld [vmem:[#allocation5 + $0x558] sm:$0xff] }
  0xd6   :  { %v828_v48 = vpack.c.bf16 %v262_v41, %v258_v40  ;;  %v302_v40 = vld [vmem:[#allocation5 + $0x6a8] sm:$0xff]  ;;  %v300_v41 = vld [vmem:[#allocation5 + $0x698] sm:$0xff] }
  0xd7   :  { %v88_v44 = vmul.f32 %v86_v43, %v1154_v6  ;;  %v227_v6 = vld [vmem:[#allocation5 + $0x450] sm:$0xff]  ;;  %v264_v43 = vld [vmem:[#allocation5 + $0x578] sm:$0xff] }
  0xd8   :  { %v942_v9 = vpack.c.bf16 %v231_v61, %v227_v6  ;;  %v832_v6 = vpack.c.bf16 %v270_v53, %v266_v52  ;;  %v310_v52 = vld [vmem:[#allocation5 + $0x6e8] sm:$0xff]  ;;  %v308_v53 = vld [vmem:[#allocation5 + $0x6d8] sm:$0xff] }
  0xd9   :  { %v368_v49 = vcombine.high %v88_v44, %v88_v44  ;;  %v375_v50 = vrot.slane %v88_v44, %v1152_v5  ;;  %v826_v44 = vpack.c.bf16 %v253_v35, %v249_v34  ;;  %v293_v34 = vld [vmem:[#allocation5 + $0x660] sm:$0xff]  ;;  %v844_v35 = vpack.c.bf16 %v294_v28, %v290_v27  ;;  %v334_v27 = vld [vmem:[#allocation5 + $0x7a8] sm:$0xff]  ;;  %v332_v28 = vld [vmem:[#allocation5 + $0x798] sm:$0xff] }
  0xdb   :  { %v383_v55 = vcombine.high %v375_v50, %v375_v50  ;;  %v1168_v58 = vrot.slane %v368_v49, %v1152_v5  ;;  %v956_v49 = vpack.c.bf16 %v264_v43, %v260_v42  ;;  %v304_v42 = vld [vmem:[#allocation5 + $0x6b8] sm:$0xff] }
  0xdd   :  { %453 = vmatprep.mubr.f32.mxu0 %v383_v55  ;;  %595 = vmatprep.mubr.f32.mxu1 %v383_v55  ;;  %v384_v63 = vcombine.high %v1168_v58, %v1168_v58  ;;  %v272_v55 = vld [vmem:[#allocation5 + $0x5b8] sm:$0xff] }
  0xde   :  { %454 = vmatmul.mubr.f32.vlgmr.msra.gmra.mrb[0].mxu0 %v375_v50  ;;  %596 = vmatmul.mubr.f32.vlgmr.msra.gmra.mrb[0].mxu1 %v375_v50  ;;  %v259_v50 = vld [vmem:[#allocation5 + $0x550] sm:$0xff]  ;;  %v960_v61 = vpack.c.bf16 %v272_v55, %v268_v54  ;;  %v312_v54 = vld [vmem:[#allocation5 + $0x6f8] sm:$0xff] }
  0xdf   :  { %811 = vmatpush1.bf16.msra.mxu0 %v810_v56  ;;  %939 = vmatpush1.bf16.msra.mxu1 %v938_v57  ;;  %v830_v56 = vpack.c.bf16 %v261_v47, %v257_v46  ;;  %v958_v57 = vpack.c.bf16 %v263_v51, %v259_v50  ;;  %v301_v46 = vld [vmem:[#allocation5 + $0x6a0] sm:$0xff]  ;;  %v848_v47 = vpack.c.bf16 %v302_v40, %v298_v39  ;;  %v303_v50 = vld [vmem:[#allocation5 + $0x6b0] sm:$0xff]  ;;  %v306_v51 = vld [vmem:[#allocation5 + $0x6c8] sm:$0xff] }
  0xe0   :  { %524 = vmatprep.mubr.f32.mxu0 %v384_v63  ;;  %666 = vmatprep.mubr.f32.mxu1 %v384_v63  ;;  %v271_v63 = vld [vmem:[#allocation5 + $0x5b0] sm:$0xff]  ;;  %v852_v60 = vpack.c.bf16 %v310_v52, %v306_v51  ;;  %v342_v39 = vld [vmem:[#allocation5 + $0x7e8] sm:$0xff]  ;;  %v340_v40 = vld [vmem:[#allocation5 + $0x7d8] sm:$0xff]  ;;  %v349_v52 = vsub.s32 0, %v1149_v3 }
  0xe1   :  { %813 = vmatprep.subr.bf16.mxu0 %v812_v0  ;;  %941 = vmatprep.subr.bf16.mxu1 %v940_v1  ;;  %v274_v0 = vld [vmem:[#allocation5 + $0x5c8] sm:$0xff] }
  0xe2   :  { %v278_v1 = vld [vmem:[#allocation5 + $0x5e8] sm:$0xff] }
  0xe3   :  { %815 = vmatpush1.bf16.msra.mxu0 %v814_v8  ;;  %943 = vmatpush1.bf16.msra.mxu1 %v942_v9  ;;  %v962_v8 = vpack.c.bf16 %v271_v63, %v267_v62  ;;  %v273_v9 = vld [vmem:[#allocation5 + $0x5c0] sm:$0xff]  ;;  %v836_v11 = vpack.c.bf16 %v278_v1, %v274_v0  ;;  %v311_v62 = vld [vmem:[#allocation5 + $0x6f0] sm:$0xff]  ;;  %v314_v63 = vld [vmem:[#allocation5 + $0x708] sm:$0xff] }
  0xe4   :  { %817 = vmatprep.subr.bf16.mxu0 %v816_v12  ;;  %945 = vmatprep.subr.bf16.mxu1 %v944_v13  ;;  %v964_v12 = vpack.c.bf16 %v280_v4, %v276_v2  ;;  %v275_v13 = vld [vmem:[#allocation5 + $0x5d0] sm:$0xff]  ;;  %v838_v19 = vpack.c.bf16 %v277_v10, %v273_v9  ;;  %v318_v0 = vld [vmem:[#allocation5 + $0x728] sm:$0xff]  ;;  %v316_v1 = vld [vmem:[#allocation5 + $0x718] sm:$0xff] }
  0xe5   :  { %v320_v2 = vld [vmem:[#allocation5 + $0x738] sm:$0xff]  ;;  %v317_v9 = vld [vmem:[#allocation5 + $0x720] sm:$0xff]  ;;  %v856_v10 = vpack.c.bf16 %v318_v0, %v314_v63 }
  0xe7   :  { %819 = vmatpush1.bf16.msra.mxu0 %v818_v20  ;;  %947 = vmatpush1.bf16.msra.mxu1 %v946_v21  ;;  %v966_v20 = vpack.c.bf16 %v279_v14, %v275_v13  ;;  %v281_v21 = vld [vmem:[#allocation5 + $0x600] sm:$0xff]  ;;  %v319_v13 = vld [vmem:[#allocation5 + $0x730] sm:$0xff]  ;;  %v322_v14 = vld [vmem:[#allocation5 + $0x748] sm:$0xff] }
  0xe8   :  { %821 = vmatprep.subr.bf16.mxu0 %v820_v24  ;;  %949 = vmatprep.subr.bf16.mxu1 %v948_v25  ;;  %v968_v24 = vpack.c.bf16 %v288_v18, %v284_v17  ;;  %v283_v25 = vld [vmem:[#allocation5 + $0x610] sm:$0xff]  ;;  %v842_v31 = vpack.c.bf16 %v285_v22, %v281_v21  ;;  %v328_v17 = vld [vmem:[#allocation5 + $0x778] sm:$0xff]  ;;  %v325_v21 = vld [vmem:[#allocation5 + $0x760] sm:$0xff]  ;;  %v860_v22 = vpack.c.bf16 %v326_v15, %v322_v14 }
  0xeb   :  { %823 = vmatpush1.bf16.msra.mxu0 %v822_v32  ;;  %951 = vmatpush1.bf16.msra.mxu1 %v950_v33  ;;  %v970_v32 = vpack.c.bf16 %v287_v26, %v283_v25  ;;  %v289_v33 = vld [vmem:[#allocation5 + $0x640] sm:$0xff]  ;;  %v327_v25 = vld [vmem:[#allocation5 + $0x770] sm:$0xff]  ;;  %v330_v26 = vld [vmem:[#allocation5 + $0x788] sm:$0xff] }
  0xec   :  { %825 = vmatprep.subr.bf16.mxu0 %v824_v36  ;;  %953 = vmatprep.subr.bf16.mxu1 %v952_v37  ;;  %v972_v36 = vpack.c.bf16 %v296_v30, %v292_v29  ;;  %v291_v37 = vld [vmem:[#allocation5 + $0x650] sm:$0xff]  ;;  %v846_v43 = vpack.c.bf16 %v293_v34, %v289_v33  ;;  %v336_v29 = vld [vmem:[#allocation5 + $0x7b8] sm:$0xff]  ;;  %v333_v33 = vld [vmem:[#allocation5 + $0x7a0] sm:$0xff]  ;;  %v864_v34 = vpack.c.bf16 %v334_v27, %v330_v26 }
  0xef   :  { %827 = vmatpush1.bf16.msra.mxu0 %v826_v44  ;;  %955 = vmatpush1.bf16.msra.mxu1 %v954_v45  ;;  %v974_v44 = vpack.c.bf16 %v295_v38, %v291_v37  ;;  %v297_v45 = vld [vmem:[#allocation5 + $0x680] sm:$0xff]  ;;  %v335_v37 = vld [vmem:[#allocation5 + $0x7b0] sm:$0xff]  ;;  %v338_v38 = vld [vmem:[#allocation5 + $0x7c8] sm:$0xff] }
  0xf0   :  { %829 = vmatprep.subr.bf16.mxu0 %v828_v48  ;;  %957 = vmatprep.subr.bf16.mxu1 %v956_v49  ;;  %v976_v48 = vpack.c.bf16 %v304_v42, %v300_v41  ;;  %v299_v49 = vld [vmem:[#allocation5 + $0x690] sm:$0xff]  ;;  %v850_v55 = vpack.c.bf16 %v301_v46, %v297_v45  ;;  %v344_v41 = vld [vmem:[#allocation5 + $0x7f8] sm:$0xff]  ;;  %v868_v45 = vpack.c.bf16 %v342_v39, %v338_v38 }
  0xf1   :  { %v996_v46 = vpack.c.bf16 %v344_v41, %v340_v40 }
  0xf3   :  { %831 = vmatpush1.bf16.msra.mxu0 %v830_v56  ;;  %959 = vmatpush1.bf16.msra.mxu1 %v958_v57  ;;  %v978_v56 = vpack.c.bf16 %v303_v50, %v299_v49  ;;  %v305_v57 = vld [vmem:[#allocation5 + $0x6c0] sm:$0xff]  ;;  %v343_v49 = vld [vmem:[#allocation5 + $0x7f0] sm:$0xff] }
  0xf4   :  { %833 = vmatprep.subr.bf16.mxu0 %v832_v6  ;;  %961 = vmatprep.subr.bf16.mxu1 %v960_v61  ;;  %v980_v6 = vpack.c.bf16 %v312_v54, %v308_v53  ;;  %v307_v61 = vld [vmem:[#allocation5 + $0x6d0] sm:$0xff]  ;;  %v854_v4 = vpack.c.bf16 %v309_v59, %v305_v57  ;;  %v357_v53 = vsub.s32 2, %v1149_v3  ;;  %v345_v54 = vld [vmem:[%s1201_s2] sm:$0xf]  ;;  %s1097_s2 = smov [#allocation7]  }
  0xf5   :  { %v350_v57 = vrot.slane %v345_v54, %v349_v52  ;;  %s734_s11 = sshll.u32 %s1097_s2, 4  ;;  %s735_s11 = int_to_ptr.vmem [resolvable:$true] %s734_s11 }
  0xf6   :  { %v358_v59 = vrot.slane %v345_v54, %v357_v53  ;;  %s1063_s12 = scalar_lea.vmem %s735_s11, 128  ;;  %p1068_p3 = scmp.lt.s32.totalorder %s735_s11, %s735_s11 }
  0xf7   :  { %835 = vmatpush1.bf16.msra.mxu0 %v834_v7  ;;  %963 = vmatpush1.bf16.msra.mxu1 %v962_v8  ;;  %v982_v7 = vpack.c.bf16 %v311_v62, %v307_v61  ;;  %v313_v8 = vld [vmem:[#allocation5 + $0x700] sm:$0xff]  ;;  %p1064_p2 = scmp.ne.s32.totalorder %s735_s11, %s1063_s12  ;;  %p1069_p4 = scmp.lt.s32.totalorder %s1063_s12, %s1063_s12 }
  0xf8   :  { %837 = vmatprep.subr.bf16.mxu0 %v836_v11  ;;  %965 = vmatprep.subr.bf16.mxu1 %v964_v12  ;;  %v984_v11 = vpack.c.bf16 %v320_v2, %v316_v1  ;;  %v315_v12 = vld [vmem:[#allocation5 + $0x710] sm:$0xff]  ;;  %v858_v18 = vpack.c.bf16 %v317_v9, %v313_v8 }
  0xf9   :  { %p1070_p5 = por %p1069_p4, %p1068_p3 }
  0xfb   :  { %839 = vmatpush1.bf16.msra.mxu0 %v838_v19  ;;  %967 = vmatpush1.bf16.msra.mxu1 %v966_v20  ;;  %v986_v19 = vpack.c.bf16 %v319_v13, %v315_v12  ;;  %v321_v20 = vld [vmem:[#allocation5 + $0x740] sm:$0xff]  ;;  %p1071_p6 = pnand %p1070_p5, %p1064_p2 }
  0xfc   :  { %841 = vmatprep.subr.bf16.mxu0 %v840_v23  ;;  %969 = vmatprep.subr.bf16.mxu1 %v968_v24  ;;  %v988_v23 = vpack.c.bf16 %v328_v17, %v324_v16  ;;  %v323_v24 = vld [vmem:[#allocation5 + $0x750] sm:$0xff]  ;;  %v862_v30 = vpack.c.bf16 %v325_v21, %v321_v20 }
  0xff   :  { %843 = vmatpush1.bf16.msra.mxu0 %v842_v31  ;;  %971 = vmatpush1.bf16.msra.mxu1 %v970_v32  ;;  %v990_v31 = vpack.c.bf16 %v327_v25, %v323_v24  ;;  %v329_v32 = vld [vmem:[#allocation5 + $0x780] sm:$0xff] }
 0x100   :  { %845 = vmatprep.subr.bf16.mxu0 %v844_v35  ;;  %973 = vmatprep.subr.bf16.mxu1 %v972_v36  ;;  %v992_v35 = vpack.c.bf16 %v336_v29, %v332_v28  ;;  %v331_v36 = vld [vmem:[#allocation5 + $0x790] sm:$0xff]  ;;  %v866_v42 = vpack.c.bf16 %v333_v33, %v329_v32 }
 0x103   :  { %847 = vmatpush1.bf16.msra.mxu0 %v846_v43  ;;  %975 = vmatpush1.bf16.msra.mxu1 %v974_v44  ;;  %v994_v43 = vpack.c.bf16 %v335_v37, %v331_v36  ;;  %v337_v44 = vld [vmem:[#allocation5 + $0x7c0] sm:$0xff] }
 0x104   :  { %849 = vmatprep.subr.bf16.mxu0 %v848_v47  ;;  %977 = vmatprep.subr.bf16.mxu1 %v976_v48  ;;  %v341_v47 = vld [vmem:[#allocation5 + $0x7e0] sm:$0xff]  ;;  %v339_v48 = vld [vmem:[#allocation5 + $0x7d0] sm:$0xff] }
 0x105   :  { %v870_v50 = vpack.c.bf16 %v341_v47, %v337_v44  ;;  %v998_v51 = vpack.c.bf16 %v343_v49, %v339_v48 }
 0x107   :  { %851 = vmatpush1.bf16.msra.mxu0 %v850_v55  ;;  %979 = vmatpush1.bf16.msra.mxu1 %v978_v56  ;;  %v353_v55 = vsub.s32 1, %v1149_v3  ;;  %v361_v56 = vsub.s32 3, %v1149_v3 }
 0x108   :  { %853 = vmatprep.subr.bf16.mxu0 %v852_v60  ;;  %981 = vmatprep.subr.bf16.mxu1 %v980_v6 }
 0x109   :  { %v354_v60 = vrot.slane %v345_v54, %v353_v55  ;;  %v362_v6 = vrot.slane %v345_v54, %v361_v56 }
 0x10b   :  { %855 = vmatpush1.bf16.msra.mxu0 %v854_v4  ;;  %983 = vmatpush1.bf16.msra.mxu1 %v982_v7 }
 0x10c   :  { %857 = vmatprep.subr.bf16.mxu0 %v856_v10  ;;  %985 = vmatprep.subr.bf16.mxu1 %v984_v11 }
 0x10f   :  { %859 = vmatpush1.bf16.msra.mxu0 %v858_v18  ;;  %987 = vmatpush1.bf16.msra.mxu1 %v986_v19 }
 0x110   :  { %861 = vmatprep.subr.bf16.mxu0 %v860_v22  ;;  %989 = vmatprep.subr.bf16.mxu1 %v988_v23 }
 0x113   :  { %863 = vmatpush1.bf16.msra.mxu0 %v862_v30  ;;  %991 = vmatpush1.bf16.msra.mxu1 %v990_v31 }
 0x114   :  { %865 = vmatprep.subr.bf16.mxu0 %v864_v34  ;;  %993 = vmatprep.subr.bf16.mxu1 %v992_v35 }
 0x117   :  { %867 = vmatpush1.bf16.msra.mxu0 %v866_v42  ;;  %995 = vmatpush1.bf16.msra.mxu1 %v994_v43 }
 0x118   :  { %869 = vmatprep.subr.bf16.mxu0 %v868_v45  ;;  %997 = vmatprep.subr.bf16.mxu1 %v996_v46 }
 0x11b   :  { %871 = vmatpush1.bf16.msra.mxu0 %v870_v50  ;;  %999 = vmatpush1.bf16.msra.mxu1 %v998_v51 }
 0x11e   :  { %525 = vmatmul.mubr.f32.vlgmr.msra.gmra.mrb[0].mxu0 %v1168_v58  ;;  %667 = vmatmul.mubr.f32.vlgmr.msra.gmra.mrb[0].mxu1 %v1168_v58 }
 0x1f1   :  { %v526_v61 = vpop.f32.mrb[0].mxu0  ;;  %v668_v62 = vpop.f32.mrb[0].mxu1 }
 0x1f2   :  { %v1000_v63 = vadd.f32 %v526_v61, %v350_v57  ;;  %v1002_v58 = vadd.f32 %v668_v62, %v358_v59  ;;  %v528_v0 = vpop.f32.mrb[1].mxu0  ;;  %v670_v1 = vpop.f32.mrb[1].mxu1 }
 0x1f3   :  { %v1001_v2 = vadd.f32 %v528_v0, %v354_v60  ;;  %v1003_v4 = vadd.f32 %v670_v1, %v362_v6 }
 0x1f4   :  { %vm673_vm1 = vcmp.ge.f32.partialorder %v1000_v63, 0.0  ;;  %v677_v7 = vmul.f32 0.2, %v1000_v63  ;;  %vm675_vm2 = vcmp.ge.f32.partialorder %v1002_v58, 0.0  ;;  %v679_v8 = vmul.f32 0.2, %v1002_v58 }
 0x1f5   :  { %vm674_vm3 = vcmp.ge.f32.partialorder %v1001_v2, 0.0  ;;  %v678_v9 = vmul.f32 0.2, %v1001_v2  ;;  %vm676_vm4 = vcmp.ge.f32.partialorder %v1003_v4, 0.0  ;;  %v680_v3 = vmul.f32 0.2, %v1003_v4 }
 0x1f6   :  { %v681_v10 = vsel %vm673_vm1, %v1000_v63, %v677_v7  ;;  %v683_v11 = vsel %vm675_vm2, %v1002_v58, %v679_v8 }
 0x1f7   :  { %v685_v12 = vmul.f32 %v681_v10, %v681_v10  ;;  %v682_v13 = vsel %vm674_vm3, %v1001_v2, %v678_v9  ;;  %v684_v14 = vsel %vm676_vm4, %v1003_v4, %v680_v3  ;;  %v687_v15 = vmul.f32 %v683_v11, %v683_v11 }
 0x1f8   :  { %v686_v16 = vmul.f32 %v682_v13, %v682_v13  ;;  %v688_v18 = vmul.f32 %v684_v14, %v684_v14 }
 0x1f9   :  { %v689_v17 = vsel %vm65_vm0, %v685_v12, 0.0  ;;  %v692_v21 = vsel %vm65_vm0, %v687_v15, 0.0 }
 0x1fa   :  { %v690_v19 = vsel %vm65_vm0, %v686_v16, 0.0  ;;  %v694_v23 = vsel %vm65_vm0, %v688_v18, 0.0 }
 0x1fb   :  { %v691_v20 = vadd.f32 %v690_v19, %v689_v17 }
 0x1fd   :  { %v693_v22 = vadd.f32 %v692_v21, %v691_v20 }
 0x1ff   :  { %v695_v24 = vadd.f32 %v694_v23, %v693_v22 }
 0x201   :  { %696 = vadd.xlane.f32.xlu0 %v695_v24 }
 0x28e   :  { %v697_v25 = vpop.xlane.xlu0 %696 }
 0x28f   :  { %v698_v26 = vmul.f32 0.001953125, %v697_v25 }
 0x291   :  { %v699_v27 = vadd.f32 1e-08, %v698_v26 }
 0x293   :  { %1017 = vrsqrt.f32 %v699_v27 }
 0x29d   :  { %v1018_v28 = vpop.eup %1017 }
 0x29e   :  { %v701_v29 = vmul.f32 %v1018_v28, %v681_v10  ;;  %v702_v30 = vmul.f32 %v1018_v28, %v682_v13  ;;  %v703_v31 = vmul.f32 %v1018_v28, %v683_v11  ;;  %v704_v32 = vmul.f32 %v1018_v28, %v684_v14 }
 0x2a0   :  { %v709_v33 = vcombine.low %v701_v29, %v702_v30  ;;  %v710_v34 = vcombine.low %v703_v31, %v704_v32 }
 0x2a2   :  { %v717_v35 = vrot.slane %v709_v33, %v1152_v5  ;;  %v724_v36 = vrot.slane %v710_v34, %v1152_v5 }
 0x2a4   :  { %v725_v37 = vcombine.low %v717_v35, %v724_v36 }
 0x2a6   :  { %727 = vst [vmem:[#allocation7] sm:$0xff] %v725_v37 }
 0x2a7   :  { %1074 = shalt.err (!%p1071_p6)
}
 0x2a8   :  { %s1075_s15 = scalar_lea.hbm %s1202_s3, 128 }
 0x2a9   :  { %p1076_p7 = scmp.ne.s32.totalorder %s1202_s3, %s1075_s15  ;;  %p1079_p8 = scmp.lt.u32.totalorder %s1075_s15, %s1202_s3 }
 0x2ab   :  { %p1081_p9 = pnand %p1079_p8, %p1076_p7 }
 0x2ad   :  { %1084 = shalt.err (!%p1081_p9)
}
 0x2ae   :  { %737 = dma.vmem_to_hbm [thread:$0]  %s735_s11, 128, %s1202_s3, [#allocation4]  }
 0x2af   :  { %1089 = dma.done.wait [#allocation4], 128  }
 0x2b0   :  { %1090 = vsyncadd [#allocation4], 4294967168 }
 0x2b1   :  { %741 = vsyncpa [#allocation3], 1 }
 0x2b2   :  { %742 = vsyncpa [#allocation6], 1 }
 0x2b3   :  { %743 = vsyncpa [#allocation4], 1 }

</bundles_post_ra>
